<compile_context>
chip_gen: v6e
topology: v6e:2x2x1
jax: 0.10.0
libtpu: 0.0.40
codegen_flags: <defaults>
</compile_context>

<pallas_src>
import functools

import jax
import jax.numpy as jnp
from jax import lax
from jax.experimental import pallas as pl
from jax.experimental.pallas import tpu as pltpu


# -----------------------------------------------------------------------------
# Per-generation knobs (128 MiB VMEM on v5e/v6e, 64 MiB/TC on v7x).
# -----------------------------------------------------------------------------
def _vmem_capacity_bytes():
    try:
        return int(pltpu.get_tpu_info().vmem_capacity_bytes)
    except Exception:
        return 64 * 1024 * 1024


_VMEM_CAP = _vmem_capacity_bytes()
VMEM_LIMIT = min(_VMEM_CAP * 3 // 4, 100 * 1024 * 1024)
TILE_M = 1024 if _VMEM_CAP > 96 * 1024 * 1024 else 512     # fused matmul row tile
CONV_TL = 512 if _VMEM_CAP > 96 * 1024 * 1024 else 256     # conv length tile
LSTM_TC = 128                                              # LSTM timesteps per chunk


# -----------------------------------------------------------------------------
# Kernel 1: fused multi-input matmul  y = act(sum_i x_i @ w_i + b [+ residual])
# -----------------------------------------------------------------------------
def _fused_linear_kernel(*refs, n_in, has_res, activation):
    xs = refs[:n_in]
    ws = refs[n_in:2 * n_in]
    b_ref = refs[2 * n_in]
    res_ref = refs[2 * n_in + 1] if has_res else None
    o_ref = refs[-1]
    acc = jnp.zeros(o_ref.shape, jnp.float32)
    for x_ref, w_ref in zip(xs, ws):
        acc = acc + jnp.dot(x_ref[...].astype(jnp.bfloat16), w_ref[...],
                            preferred_element_type=jnp.float32)
    acc = acc + b_ref[...]
    if has_res:
        acc = acc + res_ref[...]
    if activation == "relu":
        acc = jnp.maximum(acc, 0.0)
    o_ref[...] = acc.astype(o_ref.dtype)


def fused_linear(xs, ws, b, *, residual=None, activation=None, tile_m=None):
    """act(sum_i xs[i] @ ws[i] + b [+ residual]); all xs share M, all ws share N."""
    if not isinstance(xs, (list, tuple)):
        xs, ws = [xs], [ws]
    xs, ws = list(xs), list(ws)
    tile_m = TILE_M if tile_m is None else tile_m
    m = xs[0].shape[0]
    n = ws[0].shape[1]
    n_in = len(xs)
    has_res = residual is not None
    tm = m if m <= tile_m else tile_m
    grid = (pl.cdiv(m, tm),)

    in_specs = ([pl.BlockSpec((tm, x.shape[1]), lambda i: (i, 0)) for x in xs]
                + [pl.BlockSpec((w.shape[0], n), lambda i: (0, 0)) for w in ws]
                + [pl.BlockSpec((1, n), lambda i: (0, 0))])
    args = list(xs) + [w.astype(jnp.bfloat16) for w in ws] + [b.reshape(1, n)]
    if has_res:
        in_specs.append(pl.BlockSpec((tm, n), lambda i: (i, 0)))
        args.append(residual)

    kern = functools.partial(_fused_linear_kernel, n_in=n_in, has_res=has_res,
                             activation=activation)
    flops = int(sum(2 * m * x.shape[1] * n for x in xs))
    bytes_acc = int(4 * (sum(m * x.shape[1] for x in xs) + m * n)
                    + 2 * sum(w.shape[0] * n for w in ws))
    return pl.pallas_call(
        kern,
        out_shape=jax.ShapeDtypeStruct((m, n), jnp.float32),
        grid_spec=pltpu.PrefetchScalarGridSpec(
            num_scalar_prefetch=0,
            grid=grid,
            in_specs=in_specs,
            out_specs=pl.BlockSpec((tm, n), lambda i: (i, 0)),
        ),
        compiler_params=pltpu.CompilerParams(
            dimension_semantics=("parallel",),
            vmem_limit_bytes=VMEM_LIMIT),
        cost_estimate=pl.CostEstimate(flops=flops, transcendentals=0,
                                      bytes_accessed=bytes_acc),
    )(*args)


# -----------------------------------------------------------------------------
# Kernel 2: direct 'same' Conv1d + folded BN + ReLU + MaxPool fused epilogue
# -----------------------------------------------------------------------------
def _conv_pool_kernel(x_ref, w_ref, b_ref, o_ref, *, ktaps, tl, pool,
                      activation, single_tile):
    # x_ref: (1, Lp, Cin) padded input (resident per batch element)
    # w_ref: (K, Cin, Cout) bf16   b_ref: (1, Cout) f32   o_ref: (1, tl//pool, Cout)
    cout = o_ref.shape[2]
    acc = jnp.zeros((tl, cout), jnp.float32)
    if single_tile:
        for k in range(ktaps):                       # static slices, static taps
            acc = acc + jnp.dot(x_ref[0, k:k + tl, :].astype(jnp.bfloat16),
                                w_ref[k], preferred_element_type=jnp.float32)
    else:
        base = pl.multiple_of(pl.program_id(1) * tl, 8)
        for k in range(ktaps):
            acc = acc + jnp.dot(
                x_ref[0, pl.ds(base + k, tl), :].astype(jnp.bfloat16),
                w_ref[k], preferred_element_type=jnp.float32)
    acc = acc + b_ref[...]
    if activation == "relu":
        acc = jnp.maximum(acc, 0.0)
    if pool > 1:
        rows = (tl // pool) * pool                   # PyTorch MaxPool1d floors
        acc = jnp.max(acc[:rows].reshape(tl // pool, pool, cout), axis=1)
    o_ref[0] = acc.astype(o_ref.dtype)


def _choose_conv_tile(length, pool):
    if length <= CONV_TL:
        return length, 1
    step = 8 * pool
    tl = (CONV_TL // step) * step
    while tl >= step:
        if length % tl == 0:
            return tl, length // tl
        tl -= step
    return length, 1                                 # no clean tiling: single tile


def conv_pool(x, w, b, *, pool=1, activation=None):
    """'same' Conv1d (BN folded into w/b) + optional ReLU + MaxPool1d(pool).
    x: (B, L, Cin) f32, w: (K, Cin, Cout), b: (Cout,) -> (B, L//pool, Cout) f32."""
    bsz, length, cin = x.shape
    ktaps, _, cout = w.shape
    pad_total = ktaps - 1
    pad_l = pad_total // 2
    # TODO(synk): the halo is materialized with jnp.pad (one extra HBM pass of the
    #             activation); in-kernel halo handling would remove that copy.
    xp = jnp.pad(x, ((0, 0), (pad_l, pad_total - pad_l), (0, 0))) if pad_total else x
    lp = length + pad_total
    tl, nlt = _choose_conv_tile(length, pool)
    single = nlt == 1
    lout = length // pool
    tlo = lout if single else tl // pool

    kern = functools.partial(_conv_pool_kernel, ktaps=ktaps, tl=tl, pool=pool,
                             activation=activation, single_tile=single)
    flops = int(2 * bsz * length * cin * cout * ktaps)
    bytes_acc = int(4 * (bsz * lp * cin + bsz * lout * cout) + 2 * ktaps * cin * cout)
    return pl.pallas_call(
        kern,
        out_shape=jax.ShapeDtypeStruct((bsz, lout, cout), jnp.float32),
        grid_spec=pltpu.PrefetchScalarGridSpec(
            num_scalar_prefetch=0,
            grid=(bsz, nlt),
            in_specs=[
                pl.BlockSpec((1, lp, cin), lambda bi, li: (bi, 0, 0)),
                pl.BlockSpec((ktaps, cin, cout), lambda bi, li: (0, 0, 0)),
                pl.BlockSpec((1, cout), lambda bi, li: (0, 0)),
            ],
            out_specs=pl.BlockSpec((1, tlo, cout), lambda bi, li: (bi, li, 0)),
        ),
        compiler_params=pltpu.CompilerParams(
            dimension_semantics=("parallel", "parallel"),
            vmem_limit_bytes=VMEM_LIMIT),
        cost_estimate=pl.CostEstimate(flops=flops, transcendentals=0,
                                      bytes_accessed=bytes_acc),
    )(xp, w.astype(jnp.bfloat16), b.reshape(1, cout))


# -----------------------------------------------------------------------------
# Kernel 3: chunked bidirectional LSTM recurrence
# -----------------------------------------------------------------------------
def _lstm_chunk_kernel(xp_ref, whh_ref, o_ref, h_sc, c_sc, *, hidden, tc):
    # grid = (direction, batch, time-chunk); time-chunk is the sequential axis
    # xp_ref : (1, tc, 4H) f32  input projection (+ summed biases) for this dir
    # whh_ref: (1, H, 4H) bf16  recurrent weights for this direction (resident)
    # o_ref  : (1, 1, tc, H) f32 hidden states at original time positions
    d = pl.program_id(0)

    @pl.when(pl.program_id(2) == 0)
    def _():
        h_sc[...] = jnp.zeros_like(h_sc)
        c_sc[...] = jnp.zeros_like(c_sc)

    whh = whh_ref[0]                                   # (H, 4H)

    def step(s, carry):
        h, c = carry
        row = s + d * (tc - 1 - 2 * s)                 # fwd: s ; bwd: tc-1-s
        gates = xp_ref[0, pl.ds(row, 1), :] + jnp.dot(
            h.astype(jnp.bfloat16), whh, preferred_element_type=jnp.float32)
        i = jax.nn.sigmoid(gates[:, 0 * hidden:1 * hidden])
        f = jax.nn.sigmoid(gates[:, 1 * hidden:2 * hidden])
        g = jnp.tanh(gates[:, 2 * hidden:3 * hidden])
        o = jax.nn.sigmoid(gates[:, 3 * hidden:4 * hidden])
        c = f * c + i * g
        h = o * jnp.tanh(c)
        o_ref[0, 0, pl.ds(row, 1), :] = h.astype(o_ref.dtype)
        return h, c

    h_fin, c_fin = lax.fori_loop(0, tc, step, (h_sc[...], c_sc[...]))
    h_sc[...] = h_fin
    c_sc[...] = c_fin


def _choose_lstm_chunk(tlen):
    if tlen <= LSTM_TC:
        return tlen, 1
    tc = LSTM_TC - LSTM_TC % 8
    while tc >= 8:
        if tlen % tc == 0:
            return tc, tlen // tc
        tc -= 8
    return tlen, 1


def bilstm(x, p):
    """Bidirectional LSTM (batch_first).  x: (B, T, I) -> (2, B, T, H)
    with index 0 = forward, 1 = backward (PyTorch concat order)."""
    bsz, tlen, isz = x.shape
    hidden = p["w_hh"].shape[1]
    # Both directions' input projections in one MXU matmul (b_ih + b_hh folded).
    xproj = fused_linear(x.reshape(bsz * tlen, isz), p["w_ih"], p["b"])
    xproj = xproj.reshape(bsz, tlen, 8 * hidden)       # [..., fwd 4H | bwd 4H]
    tc, nc = _choose_lstm_chunk(tlen)

    def xp_map(d, b, c):       # backward direction walks chunks in reverse
        return (b, c + d * (nc - 1 - 2 * c), d)

    def whh_map(d, b, c):
        return (d, 0, 0)

    def out_map(d, b, c):
        return (d, b, c + d * (nc - 1 - 2 * c), 0)

    flops = int(2 * 2 * bsz * tlen * hidden * 4 * hidden)
    bytes_acc = int(4 * (bsz * tlen * 8 * hidden + 2 * bsz * tlen * hidden)
                    + 2 * 2 * hidden * 4 * hidden)
    return pl.pallas_call(
        functools.partial(_lstm_chunk_kernel, hidden=hidden, tc=tc),
        out_shape=jax.ShapeDtypeStruct((2, bsz, tlen, hidden), jnp.float32),
        grid_spec=pltpu.PrefetchScalarGridSpec(
            num_scalar_prefetch=0,
            grid=(2, bsz, nc),
            in_specs=[
                pl.BlockSpec((1, tc, 4 * hidden), xp_map),
                pl.BlockSpec((1, hidden, 4 * hidden), whh_map),
            ],
            out_specs=pl.BlockSpec((1, 1, tc, hidden), out_map),
            scratch_shapes=[pltpu.VMEM((1, hidden), jnp.float32),
                            pltpu.VMEM((1, hidden), jnp.float32)],
        ),
        compiler_params=pltpu.CompilerParams(
            dimension_semantics=("parallel", "parallel", "arbitrary"),
            vmem_limit_bytes=VMEM_LIMIT),
        cost_estimate=pl.CostEstimate(flops=flops, transcendentals=0,
                                      bytes_accessed=bytes_acc),
    )(xproj, p["w_hh"])


# -----------------------------------------------------------------------------
# Parameters (torch init_weights semantics; stored in kernel layout, bf16 weights)
# -----------------------------------------------------------------------------
def _xavier_uniform(key, shape, fan_in, fan_out):
    limit = (6.0 / (fan_in + fan_out)) ** 0.5
    return jax.random.uniform(key, shape, jnp.float32, -limit, limit)


def _xavier_normal(key, shape, fan_in, fan_out):
    std = (2.0 / (fan_in + fan_out)) ** 0.5
    return std * jax.random.normal(key, shape, jnp.float32)


def _init_conv(key, ktaps, cin, cout):
    # torch xavier_uniform_ on (Cout, Cin, K): fan_in = Cin*K, fan_out = Cout*K
    w = _xavier_uniform(key, (ktaps, cin, cout), cin * ktaps, cout * ktaps)
    return w, jnp.zeros((cout,), jnp.float32)


def _fold_batchnorm(w, b, gamma, beta, mean, var, eps=1e-5):
    scale = gamma / jnp.sqrt(var + eps)
    return w * scale, b * scale + (beta - mean * scale)


def _bn_params(c):
    return dict(gamma=jnp.ones((c,), jnp.float32), beta=jnp.zeros((c,), jnp.float32),
                mean=jnp.zeros((c,), jnp.float32), var=jnp.ones((c,), jnp.float32))


def _init_bilstm(key, input_size, hidden):
    ks = jax.random.split(key, 4)
    w_ih_f = _xavier_normal(ks[0], (input_size, 4 * hidden), input_size, 4 * hidden)
    w_hh_f = _xavier_normal(ks[1], (hidden, 4 * hidden), hidden, 4 * hidden)
    w_ih_b = _xavier_normal(ks[2], (input_size, 4 * hidden), input_size, 4 * hidden)
    w_hh_b = _xavier_normal(ks[3], (hidden, 4 * hidden), hidden, 4 * hidden)
    # torch has b_ih and b_hh (both zero-init); the kernel consumes their SUM.
    b_f = jnp.zeros((4 * hidden,), jnp.float32) + jnp.zeros((4 * hidden,), jnp.float32)
    b_b = jnp.zeros((4 * hidden,), jnp.float32) + jnp.zeros((4 * hidden,), jnp.float32)
    return dict(
        w_ih=jnp.concatenate([w_ih_f, w_ih_b], axis=1).astype(jnp.bfloat16),  # (I, 8H)
        w_hh=jnp.stack([w_hh_f, w_hh_b]).astype(jnp.bfloat16),                # (2, H, 4H)
        b=jnp.concatenate([b_f, b_b]),                                        # (8H,)
    )


def _init_block(key, cin, cout, ktaps):
    ks = jax.random.split(key, 3)
    w1, b1 = _init_conv(ks[0], ktaps, cin, cout)
    w1, b1 = _fold_batchnorm(w1, b1, **_bn_params(cout))          # bn1 folded
    lstm = _init_bilstm(ks[1], cout, cout)
    w2, b2 = _init_conv(ks[2], 1, 2 * cout, cout)
    return dict(conv1_w=w1.astype(jnp.bfloat16), conv1_b=b1, lstm=lstm,
                conv2_w_f=w2[0, :cout, :].astype(jnp.bfloat16),
                conv2_w_b=w2[0, cout:, :].astype(jnp.bfloat16),
                conv2_b=b2)


def init_model_params(key, n_sensors, num_classes, fs):
    ks = jax.random.split(key, 12)
    p = {}
    w0, b0 = _init_conv(ks[0], int(fs / 20), n_sensors, 32)
    w0, b0 = _fold_batchnorm(w0, b0, **_bn_params(32))
    p["conv0_w"], p["conv0_b"] = w0.astype(jnp.bfloat16), b0

    p["block1"] = _init_block(ks[1], 32, 64, int(fs / 10))
    p["block2"] = _init_block(ks[2], 64, 128, int(fs / 5))
    p["block3"] = _init_block(ks[3], 128, 256, int(fs / 2))
    p["block4"] = _init_block(ks[4], 256, 512, int(fs))

    for i, cin, kk in [(1, 64, ks[5]), (2, 128, ks[6]), (3, 256, ks[7]), (4, 512, ks[8])]:
        w, b = _init_conv(kk, 1, cin, 256)
        p[f"dec{i}_w"], p[f"dec{i}_b"] = w.astype(jnp.bfloat16), b

    wc, bc = _init_conv(ks[9], 1, 256 * 4, 128)
    wc, bc = _fold_batchnorm(wc, bc, **_bn_params(128))
    p["head_conv_w"], p["head_conv_b"] = wc[0].astype(jnp.bfloat16), bc  # (1024, 128)

    p["head_lstm"] = _init_bilstm(ks[10], 128, 64)

    p["fc_w"] = _xavier_uniform(ks[11], (128, num_classes),
                                128, num_classes).astype(jnp.bfloat16)
    p["fc_b"] = jnp.zeros((num_classes,), jnp.float32)
    return p


# -----------------------------------------------------------------------------
# Forward pass (channel-last layout)
# -----------------------------------------------------------------------------
def block_forward(p, x):
    cout = p["conv1_w"].shape[2]
    # conv1 -> BN(folded) -> MaxPool(2) -> ReLU fused (ReLU and max-pool commute)
    y = conv_pool(x, p["conv1_w"], p["conv1_b"], pool=2, activation="relu")
    bsz, tlen, _ = y.shape
    hs = bilstm(y, p["lstm"])                                     # (2, B, T, C)
    # conv2 over concat(fwd, bwd) == sum of two matmuls; residual + ReLU fused.
    out = fused_linear(
        [hs[0].reshape(bsz * tlen, cout), hs[1].reshape(bsz * tlen, cout)],
        [p["conv2_w_f"], p["conv2_w_b"]], p["conv2_b"],
        residual=y.reshape(bsz * tlen, cout), activation="relu")
    return out.reshape(bsz, tlen, cout)


def model_forward(params, x):
    """x: (B, seq_len, n_sensors) -> logits (B, num_classes)."""
    y = conv_pool(x, params["conv0_w"], params["conv0_b"], pool=2, activation="relu")

    b1 = block_forward(params["block1"], y)
    b2 = block_forward(params["block2"], b1)
    b3 = block_forward(params["block3"], b2)
    b4 = block_forward(params["block4"], b3)

    d1 = conv_pool(b1, params["dec1_w"], params["dec1_b"], pool=8, activation="relu")
    d2 = conv_pool(b2, params["dec2_w"], params["dec2_b"], pool=4, activation="relu")
    d3 = conv_pool(b3, params["dec3_w"], params["dec3_b"], pool=2, activation="relu")
    d4 = conv_pool(b4, params["dec4_w"], params["dec4_b"], pool=1, activation="relu")

    bsz, tp, _ = d1.shape
    # conv1(head) over concat([d1..d4]) == sum of four matmuls: no concat in HBM.
    zs = [d.reshape(bsz * tp, 256) for d in (d1, d2, d3, d4)]
    hw = params["head_conv_w"]
    ws = [hw[i * 256:(i + 1) * 256] for i in range(4)]
    z = fused_linear(zs, ws, params["head_conv_b"], activation="relu")
    z = z.reshape(bsz, tp, 128)

    hs = bilstm(z, params["head_lstm"])                           # (2, B, T', 64)
    last_f = hs[0, :, -1, :]
    last_b = hs[1, :, -1, :]
    fw = params["fc_w"]
    return fused_linear([last_f, last_b], [fw[:64], fw[64:]], params["fc_b"])


# -----------------------------------------------------------------------------
if __name__ == "__main__":
    key = jax.random.PRNGKey(0)
    k_param, k_x, k_chk = jax.random.split(key, 3)

    batch, seq_len, n_sensors, num_classes, fs = 2, 64, 4, 5, 20

    params = init_model_params(k_param, n_sensors, num_classes, fs)
    x = jax.random.normal(k_x, (batch, seq_len, n_sensors), jnp.float32)

    # --- unit checks of the Pallas kernels vs plain-JAX math -----------------
    ka, kb, kc = jax.random.split(k_chk, 3)

    xa = jax.random.normal(ka, (24, 96), jnp.float32)
    wa = jax.random.normal(kb, (96, 160), jnp.float32) * 0.1
    ba = jax.random.normal(kc, (160,), jnp.float32) * 0.1
    assert jnp.allclose(fused_linear(xa, wa, ba, activation="relu"),
                        jnp.maximum(xa @ wa + ba, 0.0), atol=5e-2, rtol=5e-2)

    xc = jax.random.normal(ka, (2, 16, 8), jnp.float32)
    wc = jax.random.normal(kb, (5, 8, 32), jnp.float32) * 0.1
    bc = jax.random.normal(kc, (32,), jnp.float32) * 0.1
    xcp = jnp.pad(xc, ((0, 0), (2, 2), (0, 0)))
    conv_ref = jnp.maximum(sum(xcp[:, k:k + 16, :] @ wc[k] for k in range(5)) + bc, 0.0)
    pool_ref = jnp.max(conv_ref.reshape(2, 8, 2, 32), axis=2)
    assert jnp.allclose(conv_pool(xc, wc, bc, pool=2, activation="relu"),
                        pool_ref, atol=5e-2, rtol=5e-2)

    lstm_p = _init_bilstm(kb, 8, 64)
    xl = jax.random.normal(ka, (2, 6, 8), jnp.float32)

    def lstm_ref_dir(xseq, w_ih, w_hh, b, hidden, reverse):
        if reverse:
            xseq = xseq[:, ::-1]
        def step(carry, xt):
            h, c = carry
            gates = xt @ w_ih + b + h @ w_hh
            i, f, g, o = jnp.split(gates, 4, axis=-1)
            c = jax.nn.sigmoid(f) * c + jax.nn.sigmoid(i) * jnp.tanh(g)
            h = jax.nn.sigmoid(o) * jnp.tanh(c)
            return (h, c), h
        init = (jnp.zeros((xseq.shape[0], hidden)), jnp.zeros((xseq.shape[0], hidden)))
        _, hseq = jax.lax.scan(step, init, xseq.transpose(1, 0, 2))
        hseq = hseq.transpose(1, 0, 2)
        return hseq[:, ::-1] if reverse else hseq

    wih32 = lstm_p["w_ih"].astype(jnp.float32)
    whh32 = lstm_p["w_hh"].astype(jnp.float32)
    hs_chk = bilstm(xl, lstm_p)
    fwd_ref = lstm_ref_dir(xl, wih32[:, :256], whh32[0], lstm_p["b"][:256], 64, False)
    bwd_ref = lstm_ref_dir(xl, wih32[:, 256:], whh32[1], lstm_p["b"][256:], 64, True)
    assert jnp.allclose(hs_chk[0], fwd_ref, atol=5e-2, rtol=5e-2)
    assert jnp.allclose(hs_chk[1], bwd_ref, atol=5e-2, rtol=5e-2)

    # --- full model forward ---------------------------------------------------
    fwd = jax.jit(lambda inp: model_forward(params, inp))
    logits = fwd(x)
    jax.block_until_ready(logits)

    assert logits.shape == (batch, num_classes)
    assert bool(jnp.all(jnp.isfinite(logits)))
    print("KERNEL_OK")
</pallas_src>

<mosaic_0001>
module attributes {stable_mosaic.version = 11 : i64} {
  func.func @_fused_linear_kernel(%arg0: i32, %arg1: memref<24x96xf32, #tpu.memory_space<vmem>>, %arg2: memref<96x160xbf16, #tpu.memory_space<vmem>>, %arg3: memref<1x160xf32, #tpu.memory_space<vmem>>, %arg4: memref<24x160xf32, #tpu.memory_space<vmem>>) attributes {dimension_semantics = [#tpu.dimension_semantics<parallel>], iteration_bounds = array<i64: 1>, scalar_prefetch = 0 : i64, scratch_operands = 0 : i64, tpu.core_type = #tpu.core_type<tc>, window_params = [{transform_indices = @transform_0, window_bounds = array<i64: 24, 96>}, {pipeline_mode = #tpu.pipeline_mode<synchronous>, transform_indices = @transform_1, window_bounds = array<i64: 96, 160>}, {pipeline_mode = #tpu.pipeline_mode<synchronous>, transform_indices = @transform_2, window_bounds = array<i64: 1, 160>}, {transform_indices = @transform_3, window_bounds = array<i64: 24, 160>}]} {
    %cst = arith.constant 0.000000e+00 : f32
    %0 = vector.broadcast %cst : f32 to vector<24x160xf32>
    %c0 = arith.constant 0 : index
    %c0_0 = arith.constant 0 : index
    %1 = vector.load %arg1[%c0, %c0_0] : memref<24x96xf32, #tpu.memory_space<vmem>>, vector<24x96xf32>
    %2 = arith.truncf %1 : vector<24x96xf32> to vector<24x96xbf16>
    %c0_1 = arith.constant 0 : index
    %c0_2 = arith.constant 0 : index
    %3 = vector.load %arg2[%c0_1, %c0_2] : memref<96x160xbf16, #tpu.memory_space<vmem>>, vector<96x160xbf16>
    %cst_3 = arith.constant dense<0.000000e+00> : vector<24x160xf32>
    %4 = tpu.matmul %2, %3, %cst_3 {dimension_numbers = #tpu.dot_dimension_numbers<[1], [0], [0], [1], [0, 0, 1, 1], [], []>} : vector<24x96xbf16>, vector<96x160xbf16>, vector<24x160xf32> -> vector<24x160xf32>
    %5 = arith.addf %0, %4 : vector<24x160xf32>
    %c0_4 = arith.constant 0 : index
    %c0_5 = arith.constant 0 : index
    %6 = vector.load %arg3[%c0_4, %c0_5] : memref<1x160xf32, #tpu.memory_space<vmem>>, vector<1x160xf32>
    %7 = vector.broadcast %6 : vector<1x160xf32> to vector<24x160xf32>
    %8 = arith.addf %5, %7 : vector<24x160xf32>
    %cst_6 = arith.constant 0.000000e+00 : f32
    %9 = vector.broadcast %cst_6 : f32 to vector<24x160xf32>
    %10 = arith.maximumf %8, %9 : vector<24x160xf32>
    %c0_7 = arith.constant 0 : index
    %c0_8 = arith.constant 0 : index
    %11 = vector.load %arg4[%c0_7, %c0_8] : memref<24x160xf32, #tpu.memory_space<vmem>>, vector<24x160xf32>
    tpu.vector_store %arg4[%c0_7, %c0_8], %10 {strides = array<i32>} : memref<24x160xf32, #tpu.memory_space<vmem>>, vector<24x160xf32>,
    return
  }
  func.func @transform_0(%arg0: i32) -> (i32, i32) {
    %c0_i32 = arith.constant 0 : i32
    %c0_i32_0 = arith.constant 0 : i32
    return %arg0, %c0_i32 : i32, i32
  }
  func.func @transform_1(%arg0: i32) -> (i32, i32) {
    %c0_i32 = arith.constant 0 : i32
    %c0_i32_0 = arith.constant 0 : i32
    %c0_i32_1 = arith.constant 0 : i32
    return %c0_i32, %c0_i32_0 : i32, i32
  }
  func.func @transform_2(%arg0: i32) -> (i32, i32) {
    %c0_i32 = arith.constant 0 : i32
    %c0_i32_0 = arith.constant 0 : i32
    %c0_i32_1 = arith.constant 0 : i32
    return %c0_i32, %c0_i32_0 : i32, i32
  }
  func.func @transform_3(%arg0: i32) -> (i32, i32) {
    %c0_i32 = arith.constant 0 : i32
    %c0_i32_0 = arith.constant 0 : i32
    return %arg0, %c0_i32 : i32, i32
  }
}

</mosaic_0001>

<bundles_post_ra>
// kernel: tpu_custom_call.1
= control target key start
LH: loop header
LB: loop body
LE: loop exit
PB: predicated region body
PF: predicated region fallthrough
CT: control target
= control target key end

     0   :  { %v262_v2 = vmov 0   ;;  %s340_s0 = inlined_call_operand.vmem [shape: f32[24,96], index: 0, kind: input, shape index: {}]   ;;  %s341_s1 = inlined_call_operand.vmem [shape: bf16[96,160], index: 1, kind: input, shape index: {}]   ;;  %s342_s2 = inlined_call_operand.vmem [shape: f32[1,160], index: 2, kind: input, shape index: {}]   ;;  %s343_s3 = inlined_call_operand.hbm [shape: f32[24,160], index: 3, kind: output, shape index: {}]  }
   0x1   :  { %v222_v0 = vld [vmem:[%s341_s1 + $0x54] ss:$8 sps:$4 sm:$0xff]   ;;  %v224_v1 = vld [vmem:[%s341_s1 + $0x50] ss:$8 sps:$4 sm:$0xff]   ;;  %144 = vmatprep.mubr.bf16.mxu0 %v262_v2  ;;  %154 = vmatprep.mubr.bf16.mxu1 %v262_v2  ;;  %v225_v3 = vld [vmem:[%s341_s1 + $0x44] ss:$8 sps:$4 sm:$0xff]  }
   0x2   :  { %116 = vmatprep.subr.bf16.mxu0 %v222_v0  ;;  %206 = vmatprep.subr.bf16.mxu1 %v222_v0  ;;  %v227_v4 = vld [vmem:[%s341_s1 + $0x40] ss:$8 sps:$4 sm:$0xff]   ;;  %v228_v5 = vld [vmem:[%s341_s1 + $0x34] ss:$8 sps:$4 sm:$0xff]   ;;  %v230_v6 = vld [vmem:[%s341_s1 + $0x30] ss:$8 sps:$4 sm:$0xff]  }
   0x3   :  { %117 = vmatpush1.bf16.msra.mxu0 %v224_v1  ;;  %212 = vmatpush1.bf16.msra.mxu1 %v224_v1  ;;  %v231_v7 = vld [vmem:[%s341_s1 + $0x24] ss:$8 sps:$4 sm:$0xff]  }
   0x4   :  { %118 = vmatprep.subr.bf16.mxu0 %v225_v3  ;;  %207 = vmatprep.subr.bf16.mxu1 %v225_v3 }
   0x7   :  { %119 = vmatpush1.bf16.msra.mxu0 %v227_v4  ;;  %213 = vmatpush1.bf16.msra.mxu1 %v227_v4 }
   0x8   :  { %120 = vmatprep.subr.bf16.mxu0 %v228_v5  ;;  %208 = vmatprep.subr.bf16.mxu1 %v228_v5 }
   0x9   :  { %8 = vsyncpa [#allocation3], 0  ;;  %v233_v8 = vld [vmem:[%s341_s1 + $0x20] ss:$8 sps:$4 sm:$0xff]   ;;  %v234_v9 = vld [vmem:[%s341_s1 + $0x14] ss:$8 sps:$4 sm:$0xff]   ;;  %v35_v18 = vlaneseq }
   0xa   :  { %v236_v10 = vld [vmem:[%s341_s1 + $0x10] ss:$8 sps:$4 sm:$0xff]   ;;  %v237_v11 = vld [vmem:[%s341_s1 + $0x4] ss:$8 sps:$4 sm:$0xff]   ;;  %v239_v12 = vld [vmem:[%s341_s1] ss:$8 sps:$4 sm:$0xff]  }
   0xb   :  { %121 = vmatpush1.bf16.msra.mxu0 %v230_v6  ;;  %214 = vmatpush1.bf16.msra.mxu1 %v230_v6  ;;  %v16_v13 = vld [vmem:[%s340_s0] sm:$0xff]  ;;  %v17_v14 = vld [vmem:[%s340_s0 + $0x8] sm:$0xff]  ;;  %v18_v15 = vld [vmem:[%s340_s0 + $0x10] sm:$0xff]  ;;  %vm105_vm0 = vcmask 785408   ;;  %v36_v19 = vshrl.u32 %v35_v18, 7  ;;  %vm170_vm1 = vcmask 261120  }
   0xc   :  { %122 = vmatprep.subr.bf16.mxu0 %v231_v7  ;;  %209 = vmatprep.subr.bf16.mxu1 %v231_v7  ;;  %v19_v16 = vpack.c.bf16 %v17_v14, %v16_v13  ;;  %v20_v17 = vpack.c.bf16 %v18_v15, %v18_v15  ;;  %v33_v21 = vld [vmem:[%s342_s2] sm:$0x3]  ;;  %s263_s0 = smov [#allocation2]  }
   0xd   :  { %v37_v20 = vsub.s32 0, %v36_v19  ;;  %v41_v22 = vsub.s32 1, %v36_v19  ;;  %s181_s2 = sshll.u32 %s263_s0, 4  ;;  %s182_s2 = int_to_ptr.vmem [resolvable:$true] %s181_s2 }
   0xe   :  { %s240_s16 = scalar_lea.vmem %s182_s2, 768  ;;  %p245_p1 = scmp.lt.s32.totalorder %s182_s2, %s182_s2 }
   0xf   :  { %123 = vmatpush1.bf16.msra.mxu0 %v233_v8  ;;  %215 = vmatpush1.bf16.msra.mxu1 %v233_v8  ;;  %v38_v23 = vrot.slane %v33_v21, %v37_v20  ;;  %v42_v24 = vrot.slane %v33_v21, %v41_v22  ;;  %p241_p0 = scmp.ne.s32.totalorder %s182_s2, %s240_s16  ;;  %p246_p2 = scmp.lt.s32.totalorder %s240_s16, %s240_s16 }
  0x10   :  { %124 = vmatprep.subr.bf16.mxu0 %v234_v9  ;;  %210 = vmatprep.subr.bf16.mxu1 %v234_v9 }
  0x11   :  { %p247_p3 = por %p246_p2, %p245_p1 }
  0x13   :  { %125 = vmatpush1.bf16.msra.mxu0 %v236_v10  ;;  %216 = vmatpush1.bf16.msra.mxu1 %v236_v10  ;;  %p248_p4 = pnand %p247_p3, %p241_p0 }
  0x14   :  { %126 = vmatprep.subr.bf16.mxu0 %v237_v11  ;;  %211 = vmatprep.subr.bf16.mxu1 %v237_v11 }
  0x17   :  { %127 = vmatpush1.bf16.msra.mxu0 %v239_v12  ;;  %217 = vmatpush1.bf16.msra.mxu1 %v239_v12 }
  0x1a   :  { %204 = vmatmul.mubr.msk.bf16.vlgmr.msra.gmra.mxu0 %vm105_vm0, %v19_v16  ;;  %205 = vmatmul.mubr.msk.bf16.vlgmr.msra.gmra.mxu1 %vm105_vm0, %v20_v17 }
  0xda   :  { %v146_v25 = vpop.f32.mrf.mxu0  ;;  %v156_v26 = vpop.f32.mrf.mxu1 }
  0xdb   :  { %v147_v27 = vadd.f32 %v146_v25, %v38_v23  ;;  %v157_v28 = vadd.f32 %v156_v26, %v38_v23 }
  0xdc   :  { %v148_v29 = vpop.f32.mrf.mxu0  ;;  %v158_v30 = vpop.f32.mrf.mxu1 }
  0xdd   :  { %v163_v31 = vmax.f32 %v147_v27, 0.0  ;;  %v167_v32 = vmax.f32 %v157_v28, 0.0  ;;  %v149_v33 = vadd.f32 %v148_v29, %v42_v24  ;;  %v159_v34 = vadd.f32 %v158_v30, %v42_v24 }
  0xde   :  { %v150_v35 = vpop.f32.mrf.mxu0  ;;  %v160_v36 = vpop.f32.mrf.mxu1 }
  0xdf   :  { %169 = vst [vmem:[#allocation2] sm:$0xff] %v163_v31  ;;  %174 = vst [vmem:[#allocation2 + $0x20] sm:$0xff] %v167_v32  ;;  %v164_v37 = vmax.f32 %v149_v33, 0.0  ;;  %v168_v38 = vmax.f32 %v159_v34, 0.0  ;;  %v151_v39 = vadd.f32 %v150_v35, %v38_v23 }
  0xe0   :  { %v152_v40 = vpop.f32.mrf.mxu0  ;;  %v161_v41 = vpop.f32.mrf.mxu1 }
  0xe1   :  { %171 = vst.msk [vmem:[#allocation2 + $0x8] sm:$0xff] %vm170_vm1, %v164_v37  ;;  %175 = vst.msk [vmem:[#allocation2 + $0x28] sm:$0xff] %vm170_vm1, %v168_v38  ;;  %v165_v42 = vmax.f32 %v151_v39, 0.0  ;;  %v153_v43 = vadd.f32 %v152_v40, %v42_v24 }
  0xe3   :  { %172 = vst [vmem:[#allocation2 + $0x10] sm:$0xff] %v165_v42  ;;  %v166_v44 = vmax.f32 %v153_v43, 0.0 }
  0xe5   :  { %173 = vst.msk [vmem:[#allocation2 + $0x18] sm:$0xff] %vm170_vm1, %v166_v44 }
  0xe6   :  { %251 = shalt.err (!%p248_p4)
}
  0xe7   :  { %s264_s17 = smov 256   ;;  %s265_s18 = smov 16  }
  0xe8   :  { %187 = dma.vmem_to_hbm [thread:$0]  %s182_s2, 768, %s343_s3, [#allocation3], %s264_s17, %s264_s17, %s265_s18  }
  0xe9   :  { %260 = dma.done.wait [#allocation3], 768  }
  0xea   :  { %261 = vsyncadd [#allocation3], 4294966528 }
  0xeb   :  { %191 = vsyncpa [#allocation3], 1 }

</bundles_post_ra>
